<compile_context>
chip_gen: v5e
topology: v5e:2x2
jax: 0.10.0
libtpu: 0.0.40
codegen_flags: <defaults>
</compile_context>

<pallas_src>
import functools

import jax
import jax.numpy as jnp
from jax.experimental import pallas as pl
from jax.experimental.pallas import tpu as pltpu

_EPS = 1e-6        # F.pairwise_distance default eps
_LANES = 128
_SUBLANES = 8


def _triplet_kernel(x1_ref, x2_ref, tcol_ref, trow_ref, out_ref, *,
                    margin, n_valid_rows, tm):
    # x1_ref/x2_ref: (tm, n_cols, d_pad) f32
    # tcol_ref: (tm, 1) i32 row labels, trow_ref: (1, n_cols) i32 column labels
    i = pl.program_id(0)

    diff = x1_ref[...] - x2_ref[...] + jnp.float32(_EPS)            # (tm, n, Dp)
    sq = jnp.sum(diff * diff, axis=-1)                              # (tm, n) squared distances

    mask = tcol_ref[...] == trow_ref[...]                           # (tm, n) same-label mask

    neg_inf = jnp.float32(-jnp.inf)
    pos_inf = jnp.float32(jnp.inf)
    # Deferred sqrt: max/min on squared distances (sqrt is monotone on >=0).
    ap_sq = jnp.max(jnp.where(mask, sq, neg_inf), axis=1, keepdims=True)   # (tm, 1)
    an_sq = jnp.min(jnp.where(mask, pos_inf, sq), axis=1, keepdims=True)   # (tm, 1)
    dist_ap = jnp.sqrt(jnp.maximum(ap_sq, 0.0))   # maximum(.,0) guards padded rows (-inf)
    dist_an = jnp.sqrt(an_sq)

    hinge = jnp.maximum(dist_ap - dist_an + jnp.float32(margin), 0.0)      # (tm, 1)

    # Zero-out rows that exist only because of row padding.
    row_ids = i * tm + jax.lax.broadcasted_iota(jnp.int32, (tm, 1), 0)
    hinge = jnp.where(row_ids < n_valid_rows, hinge, 0.0)

    partial = jnp.sum(hinge)                                               # scalar
    # Lane-dense, full-vreg (unmasked) store of the per-tile partial sum.
    out_ref[...] = jnp.full((1, _SUBLANES, _LANES), partial, dtype=jnp.float32)


def triplet_loss_pallas(inputs1, inputs2, targets, margin=0.3):
    """inputs1, inputs2: (n*n, D); targets: (n,) integer labels. Returns scalar loss."""
    n = int(targets.shape[0])
    d = int(inputs1.shape[-1])
    assert inputs1.shape[0] == n * n and inputs2.shape[0] == n * n

    x1 = inputs1.reshape(n, n, d).astype(jnp.float32)
    x2 = inputs2.reshape(n, n, d).astype(jnp.float32)
    t = targets.astype(jnp.int32)

    # Lane-dense feature axis: pad D up to a multiple of 128.
    d_pad = max(_LANES, ((d + _LANES - 1) // _LANES) * _LANES)

    # Row tile size: keep 2 inputs x 2 pipeline buffers within a modest VMEM budget
    # (safe on v5e 16 MiB / v6e 32 MiB / v7x 32 MiB scoped defaults, with headroom
    # for kernel intermediates).
    row_bytes = n * d_pad * 4
    tm = (16 << 20) // (4 * row_bytes)
    tm = max(_SUBLANES, min(512, tm))
    tm = (tm // _SUBLANES) * _SUBLANES
    n_up = ((n + _SUBLANES - 1) // _SUBLANES) * _SUBLANES
    tm = min(tm, n_up)
    n_pad = ((n + tm - 1) // tm) * tm
    num_tiles = n_pad // tm

    # Pad rows (axis 0) with zeros; pad x2's feature lanes with +eps so the
    # padded-lane contribution to (x1 - x2 + eps) is exactly zero for real rows.
    x1p = jnp.pad(x1, ((0, n_pad - n), (0, 0), (0, d_pad - d)))
    x2p = jnp.pad(x2, ((0, 0), (0, 0), (0, d_pad - d)), constant_values=_EPS)
    x2p = jnp.pad(x2p, ((0, n_pad - n), (0, 0), (0, 0)))

    t_col = jnp.pad(t.reshape(n, 1), ((0, n_pad - n), (0, 0)), constant_values=-1)
    t_row = t.reshape(1, n)

    kernel = functools.partial(_triplet_kernel, margin=float(margin),
                               n_valid_rows=n, tm=tm)

    out = pl.pallas_call(
        kernel,
        out_shape=jax.ShapeDtypeStruct((num_tiles, _SUBLANES, _LANES), jnp.float32),
        grid=(num_tiles,),
        in_specs=[
            pl.BlockSpec((tm, n, d_pad), lambda i: (i, 0, 0)),     # x1 row tile
            pl.BlockSpec((tm, n, d_pad), lambda i: (i, 0, 0)),     # x2 row tile
            pl.BlockSpec((tm, 1), lambda i: (i, 0)),               # row labels
            pl.BlockSpec((1, n), lambda i: (0, 0)),                # col labels (resident)
        ],
        out_specs=pl.BlockSpec((1, _SUBLANES, _LANES), lambda i: (i, 0, 0)),
        compiler_params=pltpu.CompilerParams(
            dimension_semantics=("parallel",),
            vmem_limit_bytes=32 * 1024 * 1024,
        ),
    )(x1p, x2p, t_col, t_row)

    return jnp.sum(out[:, 0, 0]) / jnp.float32(n)


def _triplet_loss_ref(inputs1, inputs2, targets, margin=0.3):
    """Pure-JAX reference mirroring the PyTorch forward."""
    n = targets.shape[0]
    diff = inputs1.astype(jnp.float32) - inputs2.astype(jnp.float32) + _EPS
    dist = jnp.sqrt(jnp.sum(diff * diff, axis=-1)).reshape(n, n)
    mask = targets[:, None] == targets[None, :]
    dist_ap = jnp.max(jnp.where(mask, dist, -jnp.inf), axis=1)
    dist_an = jnp.min(jnp.where(mask, jnp.inf, dist), axis=1)
    return jnp.mean(jnp.maximum(dist_ap - dist_an + margin, 0.0))


if __name__ == "__main__":
    n = 8    # number of targets -> distance matrix is (8, 8)
    d = 32   # feature dimension fed to pairwise_distance

    key = jax.random.PRNGKey(0)
    k1, k2 = jax.random.split(key)
    inputs1 = jax.random.normal(k1, (n * n, d), dtype=jnp.float32)
    inputs2 = jax.random.normal(k2, (n * n, d), dtype=jnp.float32)
    # labels with duplicates so every row has both positives and negatives
    targets = jnp.array([0, 0, 1, 1, 2, 2, 3, 3], dtype=jnp.int32)

    loss = triplet_loss_pallas(inputs1, inputs2, targets, margin=0.3)
    jax.block_until_ready(loss)

    ref = _triplet_loss_ref(inputs1, inputs2, targets, margin=0.3)
    assert jnp.allclose(loss, ref, rtol=1e-5, atol=1e-5), (loss, ref)

    print("KERNEL_OK")
</pallas_src>

<mosaic_0001>
module attributes {stable_mosaic.version = 11 : i64} {
  func.func @_triplet_kernel(%arg0: i32, %arg1: memref<8x8x128xf32, #tpu.memory_space<vmem>>, %arg2: memref<8x8x128xf32, #tpu.memory_space<vmem>>, %arg3: memref<8x1xi32, #tpu.memory_space<vmem>>, %arg4: memref<1x8xi32, #tpu.memory_space<vmem>>, %arg5: memref<1x8x128xf32, #tpu.memory_space<vmem>>) attributes {dimension_semantics = [#tpu.dimension_semantics<parallel>], iteration_bounds = array<i64: 1>, scalar_prefetch = 0 : i64, scratch_operands = 0 : i64, tpu.core_type = #tpu.core_type<tc>, window_params = [{transform_indices = @transform_0, window_bounds = array<i64: 8, 8, 128>}, {transform_indices = @transform_1, window_bounds = array<i64: 8, 8, 128>}, {transform_indices = @transform_2, window_bounds = array<i64: 8, 1>}, {pipeline_mode = #tpu.pipeline_mode<synchronous>, transform_indices = @transform_3, window_bounds = array<i64: 1, 8>}, {transform_indices = @transform_4, window_bounds = array<i64: 1, 8, 128>}]} {
    %c0 = arith.constant 0 : index
    %c0_0 = arith.constant 0 : index
    %c0_1 = arith.constant 0 : index
    %0 = vector.load %arg1[%c0, %c0_0, %c0_1] : memref<8x8x128xf32, #tpu.memory_space<vmem>>, vector<8x8x128xf32>
    %c0_2 = arith.constant 0 : index
    %c0_3 = arith.constant 0 : index
    %c0_4 = arith.constant 0 : index
    %1 = vector.load %arg2[%c0_2, %c0_3, %c0_4] : memref<8x8x128xf32, #tpu.memory_space<vmem>>, vector<8x8x128xf32>
    %2 = arith.subf %0, %1 : vector<8x8x128xf32>
    %cst = arith.constant 9.99999997E-7 : f32
    %3 = vector.broadcast %cst : f32 to vector<8x8x128xf32>
    %4 = arith.addf %2, %3 : vector<8x8x128xf32>
    %5 = arith.mulf %4, %4 : vector<8x8x128xf32>
    %cst_5 = arith.constant dense<0.000000e+00> : vector<8x8xf32>
    %6 = vector.multi_reduction <add>, %5, %cst_5 [2] : vector<8x8x128xf32> to vector<8x8xf32>
    %c0_6 = arith.constant 0 : index
    %c0_7 = arith.constant 0 : index
    %7 = vector.load %arg3[%c0_6, %c0_7] : memref<8x1xi32, #tpu.memory_space<vmem>>, vector<8x1xi32>
    %c0_8 = arith.constant 0 : index
    %c0_9 = arith.constant 0 : index
    %8 = vector.load %arg4[%c0_8, %c0_9] : memref<1x8xi32, #tpu.memory_space<vmem>>, vector<1x8xi32>
    %9 = vector.broadcast %7 : vector<8x1xi32> to vector<8x8xi32>
    %10 = vector.broadcast %8 : vector<1x8xi32> to vector<8x8xi32>
    %11 = arith.cmpi eq, %9, %10 : vector<8x8xi32>
    %cst_10 = arith.constant 0xFF800000 : f32
    %12 = vector.broadcast %cst_10 : f32 to vector<8x8xf32>
    %13 = arith.select %11, %6, %12 : vector<8x8xi1>, vector<8x8xf32>
    %cst_11 = arith.constant dense<0xFF800000> : vector<8xf32>
    %14 = vector.multi_reduction <maximumf>, %13, %cst_11 [1] : vector<8x8xf32> to vector<8xf32>
    %15 = vector.shape_cast %14 : vector<8xf32> to vector<8x1xf32>
    %cst_12 = arith.constant 0x7F800000 : f32
    %16 = vector.broadcast %cst_12 : f32 to vector<8x8xf32>
    %17 = arith.select %11, %16, %6 : vector<8x8xi1>, vector<8x8xf32>
    %cst_13 = arith.constant dense<0x7F800000> : vector<8xf32>
    %18 = vector.multi_reduction <minimumf>, %17, %cst_13 [1] : vector<8x8xf32> to vector<8xf32>
    %19 = vector.shape_cast %18 : vector<8xf32> to vector<8x1xf32>
    %cst_14 = arith.constant 0.000000e+00 : f32
    %20 = vector.broadcast %cst_14 : f32 to vector<8x1xf32>
    %21 = arith.maximumf %15, %20 : vector<8x1xf32>
    %22 = math.sqrt %21 : vector<8x1xf32>
    %23 = math.sqrt %19 : vector<8x1xf32>
    %24 = arith.subf %22, %23 : vector<8x1xf32>
    %cst_15 = arith.constant 3.000000e-01 : f32
    %25 = vector.broadcast %cst_15 : f32 to vector<8x1xf32>
    %26 = arith.addf %24, %25 : vector<8x1xf32>
    %cst_16 = arith.constant 0.000000e+00 : f32
    %27 = vector.broadcast %cst_16 : f32 to vector<8x1xf32>
    %28 = arith.maximumf %26, %27 : vector<8x1xf32>
    %c8_i32 = arith.constant 8 : i32
    %29 = arith.muli %arg0, %c8_i32 : i32
    %30 = tpu.iota {dimensions = array<i32: 0>} : vector<8x1xi32>
    %31 = vector.broadcast %29 : i32 to vector<8x1xi32>
    %32 = arith.addi %31, %30 : vector<8x1xi32>
    %c8_i32_17 = arith.constant 8 : i32
    %33 = vector.broadcast %c8_i32_17 : i32 to vector<8x1xi32>
    %34 = arith.cmpi slt, %32, %33 : vector<8x1xi32>
    %cst_18 = arith.constant 0.000000e+00 : f32
    %35 = vector.broadcast %cst_18 : f32 to vector<8x1xf32>
    %36 = arith.select %34, %28, %35 : vector<8x1xi1>, vector<8x1xf32>
    %37 = vector.shape_cast %36 : vector<8x1xf32> to vector<1x8x1xf32>
    %cst_19 = arith.constant dense<0.000000e+00> : vector<1xf32>
    %38 = vector.multi_reduction <add>, %37, %cst_19 [1, 2] : vector<1x8x1xf32> to vector<1xf32>
    %39 = vector.shape_cast %38 : vector<1xf32> to vector<1x1x1xf32>
    %40 = vector.extract %39[0, 0, 0] : f32 from vector<1x1x1xf32>
    %41 = vector.broadcast %40 : f32 to vector<1x8x128xf32>
    %c0_20 = arith.constant 0 : index
    %c0_21 = arith.constant 0 : index
    %c0_22 = arith.constant 0 : index
    %42 = vector.load %arg5[%c0_20, %c0_21, %c0_22] : memref<1x8x128xf32, #tpu.memory_space<vmem>>, vector<1x8x128xf32>
    tpu.vector_store %arg5[%c0_20, %c0_21, %c0_22], %41 {strides = array<i32>} : memref<1x8x128xf32, #tpu.memory_space<vmem>>, vector<1x8x128xf32>,
    return
  }
  func.func @transform_0(%arg0: i32) -> (i32, i32, i32) {
    %c0_i32 = arith.constant 0 : i32
    %c0_i32_0 = arith.constant 0 : i32
    %c0_i32_1 = arith.constant 0 : i32
    return %arg0, %c0_i32, %c0_i32_0 : i32, i32, i32
  }
  func.func @transform_1(%arg0: i32) -> (i32, i32, i32) {
    %c0_i32 = arith.constant 0 : i32
    %c0_i32_0 = arith.constant 0 : i32
    %c0_i32_1 = arith.constant 0 : i32
    return %arg0, %c0_i32, %c0_i32_0 : i32, i32, i32
  }
  func.func @transform_2(%arg0: i32) -> (i32, i32) {
    %c0_i32 = arith.constant 0 : i32
    %c0_i32_0 = arith.constant 0 : i32
    return %arg0, %c0_i32 : i32, i32
  }
  func.func @transform_3(%arg0: i32) -> (i32, i32) {
    %c0_i32 = arith.constant 0 : i32
    %c0_i32_0 = arith.constant 0 : i32
    %c0_i32_1 = arith.constant 0 : i32
    return %c0_i32, %c0_i32_0 : i32, i32
  }
  func.func @transform_4(%arg0: i32) -> (i32, i32, i32) {
    %c0_i32 = arith.constant 0 : i32
    %c0_i32_0 = arith.constant 0 : i32
    %c0_i32_1 = arith.constant 0 : i32
    return %arg0, %c0_i32, %c0_i32_0 : i32, i32, i32
  }
}

</mosaic_0001>

<bundles_post_ra>
// kernel: tpu_custom_call.1
= control target key start
LH: loop header
LB: loop body
LE: loop exit
PB: predicated region body
PF: predicated region fallthrough
CT: control target
= control target key end

     0   :  { %9 = vsyncpa [#allocation3], 0  ;;  %s360_s0 = inlined_call_operand.hbm [shape: f32[8,8,128], index: 0, kind: input, shape index: {}]   ;;  %s361_s1 = inlined_call_operand.hbm [shape: f32[8,8,128], index: 1, kind: input, shape index: {}]   ;;  %s362_s2 = inlined_call_operand.vmem [shape: s32[8,1], index: 2, kind: input, shape index: {}]   ;;  %s363_s3 = inlined_call_operand.vmem [shape: s32[1,8], index: 3, kind: input, shape index: {}]   ;;  %s364_s4 = inlined_call_operand.hbm [shape: f32[1,8,128], index: 4, kind: output, shape index: {}]  }
   0x1   :  { %10 = vsyncpa [#allocation6], 0 }
   0x2   :  { %11 = vsyncpa [#allocation4], 0  ;;  %s16_s17 = sshll.u32 %s360_s0, 4  ;;  %s314_s18 = smov [#allocation2]   ;;  %s17_s17 = int_to_ptr.hbm [resolvable:$true] %s16_s17 }
   0x3   :  { %s18_s19 = sshll.u32 %s314_s18, 4  ;;  %s29_s22 = sshll.u32 %s361_s1, 4  ;;  %s19_s19 = int_to_ptr.vmem [resolvable:$true] %s18_s19  ;;  %s30_s22 = int_to_ptr.hbm [resolvable:$true] %s29_s22 }
   0x4   :  { %s315_s23 = smov 128   ;;  %s316_s24 = smov 8  }
   0x5   :  { %24 = dma.hbm_to_vmem [thread:$0]  %s17_s17, 1024, %s19_s19, [#allocation3], %s315_s23, %s315_s23, %s316_s24  }
   0x6   :  { %s317_s25 = smov [#allocation5]  }
   0x7   :  { %s31_s26 = sshll.u32 %s317_s25, 4  ;;  %s32_s26 = int_to_ptr.vmem [resolvable:$true] %s31_s26 }
   0x8   :  { %37 = dma.hbm_to_vmem [thread:$0]  %s30_s22, 1024, %s32_s26, [#allocation6], %s315_s23, %s315_s23, %s316_s24  }
   0x9   :  { %308 = dma.done.wait [#allocation3], 1024  }
   0xa   :  { %309 = vsyncadd [#allocation3], 4294966272 }
   0xb   :  { %310 = dma.done.wait [#allocation6], 1024  }
   0xc   :  { %311 = vsyncadd [#allocation6], 4294966272  ;;  %v318_v0 = vmov 0   ;;  %v50_v1 = vld [vmem:[#allocation2] sm:$0xff]  ;;  %v52_v3 = vld [vmem:[#allocation2 + $0x10] sm:$0xff]  ;;  %v121_v43 = vlaneseq  ;;  %vm131_vm0 = vcmask 1041409  }
   0xd   :  { %229 = vset.pattern.permute.xlu2 %v318_v0  ;;  %230 = vset.pattern.permute.xlu0 %v318_v0  ;;  %v58_v2 = vld [vmem:[#allocation5] sm:$0xff]  ;;  %v60_v5 = vld [vmem:[#allocation5 + $0x10] sm:$0xff]  ;;  %v51_v10 = vld [vmem:[#allocation2 + $0x8] sm:$0xff]  ;;  %vm133_vm1 = vcmask 1042434   ;;  %vm135_vm2 = vcmask 1043459   ;;  %vm137_vm3 = vcmask 1044484  }
   0xe   :  { %v66_v4 = vsub.f32 %v50_v1, %v58_v2  ;;  %v54_v6 = vld [vmem:[#allocation2 + $0x20] sm:$0xff]  ;;  %v68_v8 = vsub.f32 %v52_v3, %v60_v5  ;;  %v59_v11 = vld [vmem:[#allocation5 + $0x8] sm:$0xff]  ;;  %v53_v12 = vld [vmem:[#allocation2 + $0x18] sm:$0xff]  ;;  %v122_v46 = vand.u32 127, %v121_v43  ;;  %vm139_vm4 = vcmask 1045509   ;;  %s210_s5 = sshll.u32 %s364_s4, 4  ;;  %s211_s5 = int_to_ptr.hbm [resolvable:$true] %s210_s5 }
   0xf   :  { %v62_v7 = vld [vmem:[#allocation5 + $0x20] sm:$0xff]  ;;  %v67_v14 = vsub.f32 %v51_v10, %v59_v11  ;;  %v61_v15 = vld [vmem:[#allocation5 + $0x18] sm:$0xff]  ;;  %v55_v16 = vld [vmem:[#allocation2 + $0x28] sm:$0xff]  ;;  %vm141_vm5 = vcmask 1046534   ;;  %vm143_vm6 = vcmask 1047559   ;;  %vm147_vm8 = vcmask 64512  }
  0x10   :  { %v70_v9 = vsub.f32 %v54_v6, %v62_v7  ;;  %v74_v13 = vadd.f32 1e-06, %v66_v4  ;;  %v63_v17 = vld [vmem:[#allocation5 + $0x28] sm:$0xff]  ;;  %v76_v18 = vadd.f32 1e-06, %v68_v8  ;;  %v69_v20 = vsub.f32 %v53_v12, %v61_v15  ;;  %v56_v28 = vld [vmem:[#allocation2 + $0x30] sm:$0xff] }
  0x11   :  { %v71_v21 = vsub.f32 %v55_v16, %v63_v17  ;;  %v75_v25 = vadd.f32 1e-06, %v67_v14  ;;  %v64_v29 = vld [vmem:[#allocation5 + $0x30] sm:$0xff]  ;;  %v57_v30 = vld [vmem:[#allocation2 + $0x38] sm:$0xff]  ;;  %v106_v41 = vld [vmem:[%s362_s2] sm:$0xff]  ;;  %vm190_vm13 = vcmask 7168  }
  0x12   :  { %v78_v19 = vadd.f32 1e-06, %v70_v9  ;;  %v82_v22 = vmul.f32 %v74_v13, %v74_v13  ;;  %v84_v23 = vmul.f32 %v76_v18, %v76_v18  ;;  %v77_v26 = vadd.f32 1e-06, %v69_v20  ;;  %v65_v31 = vld [vmem:[#allocation5 + $0x38] sm:$0xff] }
  0x13   :  { %v79_v27 = vadd.f32 1e-06, %v71_v21  ;;  %v83_v32 = vmul.f32 %v75_v25, %v75_v25  ;;  %v72_v33 = vsub.f32 %v56_v28, %v64_v29  ;;  %v73_v36 = vsub.f32 %v57_v30, %v65_v31  ;;  %v231_v59 = vld [vmem:[%s363_s3] ss:$0 sm:$0xff]  ;;  %s319_s3 = smov [#allocation7]  }
  0x14   :  { %v86_v24 = vmul.f32 %v78_v19, %v78_v19  ;;  %90 = vadd.xlane.f32.xlu0 %v82_v22  ;;  %94 = vadd.xlane.f32.xlu1 %v84_v23  ;;  %v85_v34 = vmul.f32 %v77_v26, %v77_v26  ;;  %s208_s28 = sshll.u32 %s319_s3, 4  ;;  %s209_s28 = int_to_ptr.vmem [resolvable:$true] %s208_s28 }
  0x15   :  { %v87_v35 = vmul.f32 %v79_v27, %v79_v27  ;;  %v80_v37 = vadd.f32 1e-06, %v72_v33  ;;  %v81_v38 = vadd.f32 1e-06, %v73_v36 }
  0x16   :  { %98 = vadd.xlane.f32.xlu2 %v86_v24 }
  0x17   :  { %v88_v39 = vmul.f32 %v80_v37, %v80_v37  ;;  %v89_v40 = vmul.f32 %v81_v38, %v81_v38 }
  0x1c   :  { %92 = vadd.xlane.f32.xlu0 %v83_v32  ;;  %96 = vadd.xlane.f32.xlu1 %v85_v34 }
  0x1e   :  { %100 = vadd.xlane.f32.xlu2 %v87_v35 }
  0x24   :  { %102 = vadd.xlane.f32.xlu0 %v88_v39  ;;  %104 = vadd.xlane.f32.xlu1 %v89_v40 }
  0x36   :  { %109 = vperm.xlu2 %229, %v106_v41  }
  0x87   :  { %v91_v42 = vpop.xlane.xlu0 %90  ;;  %v95_v44 = vpop.xlane.xlu1 %94 }
  0x88   :  { %v123_v48 = vperm.slane %v91_v42, %v122_v46  ;;  %v125_v52 = vperm.slane %v95_v44, %v122_v46 }
  0x89   :  { %v99_v45 = vpop.xlane.xlu2 %98 }
  0x8a   :  { %v127_v56 = vperm.slane %v99_v45, %v122_v46 }
  0x8f   :  { %v93_v47 = vpop.xlane.xlu0 %92  ;;  %v97_v50 = vpop.xlane.xlu1 %96 }
  0x90   :  { %v124_v49 = vperm.slane %v93_v47, %v122_v46  ;;  %v126_v53 = vperm.slane %v97_v50, %v122_v46 }
  0x91   :  { %v101_v51 = vpop.xlane.xlu2 %100 }
  0x92   :  { %v132_v54 = vsel %vm131_vm0, %v124_v49, %v123_v48  ;;  %v128_v58 = vperm.slane %v101_v51, %v122_v46 }
  0x93   :  { %v134_v55 = vsel %vm133_vm1, %v125_v52, %v132_v54 }
  0x94   :  { %v136_v57 = vsel %vm135_vm2, %v126_v53, %v134_v55 }
  0x95   :  { %v138_v60 = vsel %vm137_vm3, %v127_v56, %v136_v57 }
  0x96   :  { %v140_v1 = vsel %vm139_vm4, %v128_v58, %v138_v60 }
  0x97   :  { %v103_v61 = vpop.xlane.xlu0 %102  ;;  %v105_v63 = vpop.xlane.xlu1 %104 }
  0x98   :  { %v129_v62 = vperm.slane %v103_v61, %v122_v46  ;;  %v130_v2 = vperm.slane %v105_v63, %v122_v46 }
  0x99   :  { %v110_v0 = vpop.permute.xlu2 %109 }
  0x9a   :  { %vm112_vm7 = vcmp.eq.s32.totalorder %v110_v0, %v231_v59  ;;  %v142_v3 = vsel %vm141_vm5, %v129_v62, %v140_v1 }
  0x9b   :  { %v144_v4 = vsel %vm143_vm6, %v130_v2, %v142_v3 }
  0x9c   :  { %v151_v5 = vsel %vm112_vm7, inf, %v144_v4  ;;  %v146_v6 = vsel %vm112_vm7, %v144_v4, -inf }
  0x9d   :  { %v152_v7 = vsel %vm147_vm8, %v151_v5, inf  ;;  %v148_v8 = vsel %vm147_vm8, %v146_v6, -inf }
  0x9e   :  { %153 = vmin.xlane.f32.xlu1 %v152_v7  ;;  %149 = vmax.xlane.f32.xlu0 %v148_v8 }
 0x111   :  { %v154_v9 = vpop.xlane.xlu1 %153  ;;  %v150_v10 = vpop.xlane.xlu0 %149 }
 0x112   :  { %232 = vrsqrt.f32 %v154_v9  ;;  %v155_v11 = vmax.f32 %v150_v10, 0.0  ;;  %vm175_vm9 = vcmp.eq.f32.partialorder %v154_v9, inf  ;;  %v178_v28 = vand.u32 2147483648, %v154_v9 }
 0x113   :  { %vm177_vm12 = vcmp.eq.f32.partialorder %v154_v9, 0.0 }
 0x114   :  { %234 = vrsqrt.f32 %v155_v11  ;;  %vm163_vm10 = vcmp.eq.f32.partialorder %v155_v11, inf  ;;  %v166_v27 = vand.u32 2147483648, %v155_v11  ;;  %vm165_vm11 = vcmp.eq.f32.partialorder %v155_v11, 0.0 }
 0x118   :  { %v233_v12 = vpop.eup %232 }
 0x119   :  { %v169_v13 = vmul.f32 %v233_v12, %v154_v9 }
 0x11a   :  { %v235_v14 = vpop.eup %234 }
 0x11b   :  { %v170_v15 = vmul.f32 %v233_v12, %v169_v13  ;;  %v157_v16 = vmul.f32 %v235_v14, %v155_v11 }
 0x11d   :  { %v171_v17 = vmul.f32 0.5, %v170_v15  ;;  %v158_v18 = vmul.f32 %v235_v14, %v157_v16 }
 0x11f   :  { %v172_v19 = vsub.f32 1.5, %v171_v17  ;;  %v159_v20 = vmul.f32 0.5, %v158_v18 }
 0x121   :  { %v160_v21 = vsub.f32 1.5, %v159_v20  ;;  %v173_v22 = vmul.f32 %v233_v12, %v172_v19 }
 0x123   :  { %v161_v23 = vmul.f32 %v235_v14, %v160_v21  ;;  %v174_v24 = vmul.f32 %v173_v22, %v154_v9 }
 0x125   :  { %v162_v25 = vmul.f32 %v161_v23, %v155_v11  ;;  %v176_v26 = vsel %vm175_vm9, %v154_v9, %v174_v24 }
 0x126   :  { %v179_v31 = vsel %vm177_vm12, %v178_v28, %v176_v26 }
 0x127   :  { %v164_v29 = vsel %vm163_vm10, %v155_v11, %v162_v25 }
 0x128   :  { %v167_v30 = vsel %vm165_vm11, %v166_v27, %v164_v29 }
 0x129   :  { %v180_v32 = vsub.f32 %v167_v30, %v179_v31 }
 0x12b   :  { %v181_v33 = vadd.f32 0.3, %v180_v32 }
 0x12d   :  { %v182_v34 = vmax.f32 %v181_v33, 0.0 }
 0x12f   :  { %v191_v35 = vsel %vm190_vm13, %v182_v34, 0.0 }
 0x130   :  { %192 = vadd.xlane.f32.xlu0 %v191_v35 }
 0x1a3   :  { %v193_v36 = vpop.xlane.xlu0 %192 }
 0x1a4   :  { %v194_v37 = vrot.slane %v193_v36, 4 }
 0x1a6   :  { %v195_v38 = vadd.f32 %v194_v37, %v193_v36 }
 0x1a8   :  { %v196_v39 = vrot.slane %v195_v38, 2 }
 0x1aa   :  { %v197_v40 = vadd.f32 %v196_v39, %v195_v38 }
 0x1ac   :  { %v198_v41 = vrot.slane %v197_v40, 1 }
 0x1ae   :  { %v199_v42 = vadd.f32 %v198_v41, %v197_v40 }
 0x1b0   :  { %221 = vpush %v199_v42 }
 0x1e1   :  { %s222_s6 = spop %221 }
 0x1e2   :  { %v201_v43 = vstv %s222_s6 }
 0x1e3   :  { %202 = vst [vmem:[#allocation7] sm:$0xff] %v201_v43 }
 0x1e4   :  { %213 = dma.vmem_to_hbm [thread:$0]  %s209_s28, 128, %s211_s5, [#allocation4]  }
 0x1e5   :  { %312 = dma.done.wait [#allocation4], 128  }
 0x1e6   :  { %313 = vsyncadd [#allocation4], 4294967168 }
 0x1e7   :  { %218 = vsyncpa [#allocation3], 1 }
 0x1e8   :  { %219 = vsyncpa [#allocation6], 1 }
 0x1e9   :  { %220 = vsyncpa [#allocation4], 1 }

</bundles_post_ra>
